<compile_context>
chip_gen: v6e
topology: v6e:2x2x1
jax: 0.10.0
libtpu: 0.0.40
codegen_flags: <defaults>
</compile_context>

<pallas_src>
import jax
import jax.numpy as jnp
from jax.experimental import pallas as pl
from jax.experimental.pallas import tpu as pltpu

_LANE = 128
_SUBLANE = 8


def _round_up(x, m):
    return ((x + m - 1) // m) * m


def _cdiv(a, b):
    return -(-a // b)


def _make_head_kernel(hw_total, t_hw, need_mask):
    def kernel(x_ref, w1_ref, b1_ref, w2_ref, b2_ref, out_ref, acc_ref):
        hw_i = pl.program_id(1)

        @pl.when(hw_i == 0)
        def _():
            acc_ref[...] = jnp.zeros_like(acc_ref)

        # (tb, C, t_hw) native-dtype tile; pool (sum) over lanes, accumulate in f32.
        x = x_ref[...].astype(jnp.float32)
        if need_mask:
            col = hw_i * t_hw + jax.lax.broadcasted_iota(jnp.int32, (1, 1, t_hw), 2)
            x = jnp.where(col < hw_total, x, 0.0)
        acc_ref[...] += jnp.sum(x, axis=-1)                    # (tb, C)

        @pl.when(hw_i == pl.num_programs(1) - 1)
        def _():
            # fc[0] Linear + fc[1] BatchNorm1d (eval stats) + 1/HW pooling scale
            # are folded into w1/b1.  fc[2] ReLU.  fc[3] Dropout = identity
            # (eval).  fc[4] Linear padded to a lane-dense N (multiple of 128).
            pooled = acc_ref[...]
            h = jnp.dot(pooled, w1_ref[...],
                        preferred_element_type=jnp.float32) + b1_ref[...]
            h = jnp.maximum(h, 0.0)
            out_ref[...] = (jnp.dot(h, w2_ref[...],
                                    preferred_element_type=jnp.float32)
                            + b2_ref[...]).astype(out_ref.dtype)

    return kernel


def ibc_forward(feat_nchw, params, *, eps=1e-5):
    """feat_nchw: (B, C, H, W) backbone feature map. Returns (B, num_classes)."""
    B, C, H, W = feat_nchw.shape
    HW = H * W
    hidden = params["w2"].shape[0]
    num_classes = params["w2"].shape[1]

    # Free contiguous reshape only: no transpose / cast / pad of the big tensor.
    x = feat_nchw.reshape(B, C, HW)
    x_itemsize = jnp.dtype(x.dtype).itemsize

    # Fold eval-mode BatchNorm1d and the 1/HW pooling scale into Linear(C, 256).
    scale = params["gamma"] * jax.lax.rsqrt(params["var"] + eps)            # (1, hidden)
    w1f = (params["w1"].astype(jnp.float32) * scale / HW).astype(jnp.float32)
    b1f = ((params["b1"] - params["mean"]) * scale
           + params["beta"]).astype(jnp.float32)                            # (1, hidden)

    # Lane-dense output: pad num_classes up to a multiple of 128.
    n_pad = _round_up(max(num_classes, 1), _LANE)
    w2p = jnp.zeros((hidden, n_pad), jnp.float32).at[:, :num_classes].set(
        params["w2"].astype(jnp.float32))
    b2p = jnp.zeros((1, n_pad), jnp.float32).at[:, :num_classes].set(
        params["b2"].astype(jnp.float32))

    # ---- generation-aware VMEM budgets --------------------------------------
    try:
        vmem_cap = int(pltpu.get_tpu_info().vmem_capacity_bytes)
    except Exception:
        vmem_cap = 64 * 1024 * 1024
    if vmem_cap >= 100 * 1024 * 1024:            # v5e / v6e: 128 MiB VMEM
        budget_per_buffer = 20 * 1024 * 1024
        vmem_limit_cap = 96 * 1024 * 1024
    else:                                        # v7x: 64 MiB per TensorCore
        budget_per_buffer = 8 * 1024 * 1024
        vmem_limit_cap = 40 * 1024 * 1024

    # ---- tile sizes ----------------------------------------------------------
    # Batch tile: multiple of 8 (or the full batch when B < 8).  Keep >= 2
    # batch tiles when the batch allows it so megacore parts shard the axis.
    if B <= _SUBLANE:
        tb = B
    else:
        tb = min(_round_up(B, _SUBLANE), 256)
        if B >= 2 * _SUBLANE:
            tb = min(tb, _round_up(_cdiv(B, 2), _SUBLANE))

    c_pad = _round_up(C, _SUBLANE)

    # Spatial tile: full HW when it fits a vreg row, else a multiple of 128
    # sized by the DMA budget (and split >= 2 ways when there is only a single
    # batch tile so the input DMA actually pipelines).
    if HW <= _LANE:
        t_hw = HW
    else:
        chunk_bytes = tb * c_pad * _LANE * x_itemsize
        t_hw = max(_LANE, (budget_per_buffer // max(chunk_bytes, 1)) * _LANE)
        t_hw = min(t_hw, _round_up(HW, _LANE))
        if _cdiv(B, tb) == 1:
            t_hw = min(t_hw, max(_LANE, _round_up(_cdiv(HW, 2), _LANE)))

    # Weight operands: single-buffer them when large enough that the default
    # double-buffer waste matters (frees VMEM for a larger feature tile).
    w_bytes = (c_pad * _round_up(hidden, _LANE)
               + _SUBLANE * _round_up(hidden, _LANE)
               + _round_up(hidden, _SUBLANE) * n_pad
               + _SUBLANE * n_pad) * 4
    single_buffer_weights = w_bytes > (1 << 20)
    w_buf = 1 if single_buffer_weights else 2

    def vmem_need(tb_, thw_):
        x_tile = tb_ * c_pad * _round_up(thw_, _LANE) * x_itemsize
        out_tile = _round_up(tb_, _SUBLANE) * n_pad * 4
        acc = _round_up(tb_, _SUBLANE) * _round_up(C, _LANE) * 4
        return 2 * x_tile + w_buf * w_bytes + 2 * out_tile + acc

    # Clamp the tiles (never the limit) so vmem_need stays under the scoped cap.
    while vmem_need(tb, t_hw) > vmem_limit_cap:
        if t_hw > _LANE:
            t_hw = max(_LANE, (t_hw // 2 // _LANE) * _LANE)
        elif tb > _SUBLANE:
            tb = max(_SUBLANE, (tb // 2 // _SUBLANE) * _SUBLANE)
        else:
            break

    need = vmem_need(tb, t_hw)
    vmem_limit = int(min(max(need + 2 * 1024 * 1024, 16 * 1024 * 1024),
                         vmem_limit_cap))
    vmem_limit = max(vmem_limit, need + 1 * 1024 * 1024)

    grid = (_cdiv(B, tb), _cdiv(HW, t_hw))
    need_mask = (HW % t_hw) != 0

    kernel = _make_head_kernel(HW, t_hw, need_mask)
    w_kwargs = dict(pipeline_mode=pl.Buffered(1)) if single_buffer_weights else {}

    flops = B * HW * C + 2 * B * C * hidden + 2 * B * hidden * n_pad
    bytes_accessed = (x.size * x_itemsize
                      + (w1f.size + b1f.size + w2p.size + b2p.size
                         + B * n_pad) * 4)

    out = pl.pallas_call(
        kernel,
        out_shape=jax.ShapeDtypeStruct((B, n_pad), jnp.float32),
        grid_spec=pltpu.PrefetchScalarGridSpec(
            num_scalar_prefetch=0,
            grid=grid,
            in_specs=[
                pl.BlockSpec((tb, C, t_hw), lambda i, k: (i, 0, k)),       # feature tile
                pl.BlockSpec((C, hidden), lambda i, k: (0, 0), **w_kwargs),  # folded w1
                pl.BlockSpec((1, hidden), lambda i, k: (0, 0), **w_kwargs),  # folded b1
                pl.BlockSpec((hidden, n_pad), lambda i, k: (0, 0), **w_kwargs),  # padded w2
                pl.BlockSpec((1, n_pad), lambda i, k: (0, 0), **w_kwargs),   # padded b2
            ],
            out_specs=pl.BlockSpec((tb, n_pad), lambda i, k: (i, 0)),
            scratch_shapes=[pltpu.VMEM((tb, C), jnp.float32)],             # pooled-sum acc
        ),
        compiler_params=pltpu.CompilerParams(
            dimension_semantics=("parallel", "arbitrary"),
            vmem_limit_bytes=vmem_limit,
        ),
        cost_estimate=pl.CostEstimate(
            flops=flops, transcendentals=0, bytes_accessed=bytes_accessed),
    )(x, w1f, b1f, w2p, b2p)

    return out[:, :num_classes]


def init_params(key, num_features, hidden, num_classes):
    ks = jax.random.split(key, 6)
    scale1 = 1.0 / jnp.sqrt(num_features)
    scale2 = 1.0 / jnp.sqrt(hidden)
    return {
        # Linear(num_features, 256) stored as (in, out)
        "w1": jax.random.uniform(ks[0], (num_features, hidden), jnp.float32,
                                 -scale1, scale1),
        "b1": jax.random.uniform(ks[1], (1, hidden), jnp.float32, -scale1, scale1),
        # BatchNorm1d(256): affine params + running stats (eval mode)
        "gamma": jnp.ones((1, hidden), jnp.float32),
        "beta": jnp.zeros((1, hidden), jnp.float32),
        "mean": 0.1 * jax.random.normal(ks[2], (1, hidden), jnp.float32),
        "var": jnp.abs(jax.random.normal(ks[3], (1, hidden), jnp.float32)) + 0.5,
        # Linear(256, num_classes) stored as (in, out)
        "w2": jax.random.uniform(ks[4], (hidden, num_classes), jnp.float32,
                                 -scale2, scale2),
        "b2": jax.random.uniform(ks[5], (1, num_classes), jnp.float32,
                                 -scale2, scale2),
    }


def _reference(feat_nchw, p, eps=1e-5):
    B, C, H, W = feat_nchw.shape
    pooled = feat_nchw.reshape(B, C, H * W).mean(axis=-1)
    h = pooled @ p["w1"] + p["b1"]
    h = (h - p["mean"]) * (p["gamma"] / jnp.sqrt(p["var"] + eps)) + p["beta"]
    h = jnp.maximum(h, 0.0)
    return h @ p["w2"] + p["b2"]


if __name__ == "__main__":
    key = jax.random.PRNGKey(0)
    k_x, k_p = jax.random.split(key)

    # Small shapes consistent with the module:
    #   num_features=32, backbone feature map spatial 8x8, num_classes=3, batch=2
    B, num_features, H, W = 2, 32, 8, 8
    hidden, num_classes = 256, 3

    feat = jax.random.normal(k_x, (B, num_features, H, W), jnp.float32)
    params = init_params(k_p, num_features, hidden, num_classes)

    out = ibc_forward(feat, params)
    out = jax.block_until_ready(out)

    ref = _reference(feat, params)
    assert out.shape == (B, num_classes)
    assert jnp.allclose(out, ref, atol=1e-3, rtol=1e-3), "mismatch vs reference"
    print("KERNEL_OK")
</pallas_src>

<mosaic_0001>
module attributes {stable_mosaic.version = 11 : i64} {
  func.func @kernel(%arg0: i32, %arg1: i32, %arg2: memref<2x32x64xf32, #tpu.memory_space<vmem>>, %arg3: memref<32x256xf32, #tpu.memory_space<vmem>>, %arg4: memref<1x256xf32, #tpu.memory_space<vmem>>, %arg5: memref<256x128xf32, #tpu.memory_space<vmem>>, %arg6: memref<1x128xf32, #tpu.memory_space<vmem>>, %arg7: memref<2x128xf32, #tpu.memory_space<vmem>>, %arg8: memref<2x32xf32, #tpu.memory_space<vmem>>) attributes {dimension_semantics = [#tpu.dimension_semantics<parallel>, #tpu.dimension_semantics<arbitrary>], iteration_bounds = array<i64: 1, 1>, scalar_prefetch = 0 : i64, scratch_operands = 1 : i64, tpu.core_type = #tpu.core_type<tc>, window_params = [{transform_indices = @transform_0, window_bounds = array<i64: 2, 32, 64>}, {pipeline_mode = #tpu.pipeline_mode<synchronous>, transform_indices = @transform_1, window_bounds = array<i64: 32, 256>}, {pipeline_mode = #tpu.pipeline_mode<synchronous>, transform_indices = @transform_2, window_bounds = array<i64: 1, 256>}, {pipeline_mode = #tpu.pipeline_mode<synchronous>, transform_indices = @transform_3, window_bounds = array<i64: 256, 128>}, {pipeline_mode = #tpu.pipeline_mode<synchronous>, transform_indices = @transform_4, window_bounds = array<i64: 1, 128>}, {transform_indices = @transform_5, window_bounds = array<i64: 2, 128>}]} {
    %c0_i32 = arith.constant 0 : i32
    %0 = arith.cmpi eq, %arg1, %c0_i32 : i32
    %1 = arith.extui %0 : i1 to i32
    %c0_i32_0 = arith.constant 0 : i32
    %2 = arith.cmpi ne, %1, %c0_i32_0 : i32
    scf.if %2 {
      %cst_9 = arith.constant 0.000000e+00 : f32
      %11 = vector.broadcast %cst_9 : f32 to vector<2x32xf32>
      %c0_10 = arith.constant 0 : index
      %c0_11 = arith.constant 0 : index
      %12 = vector.load %arg8[%c0_10, %c0_11] : memref<2x32xf32, #tpu.memory_space<vmem>>, vector<2x32xf32>
      tpu.vector_store %arg8[%c0_10, %c0_11], %11 {strides = array<i32>} : memref<2x32xf32, #tpu.memory_space<vmem>>, vector<2x32xf32>,
    } else {
    }
    %c0 = arith.constant 0 : index
    %c0_1 = arith.constant 0 : index
    %c0_2 = arith.constant 0 : index
    %3 = vector.load %arg2[%c0, %c0_1, %c0_2] : memref<2x32x64xf32, #tpu.memory_space<vmem>>, vector<2x32x64xf32>
    %c0_3 = arith.constant 0 : index
    %c0_4 = arith.constant 0 : index
    %4 = vector.load %arg8[%c0_3, %c0_4] : memref<2x32xf32, #tpu.memory_space<vmem>>, vector<2x32xf32>
    %cst = arith.constant dense<0.000000e+00> : vector<2x32xf32>
    %5 = vector.multi_reduction <add>, %3, %cst [2] : vector<2x32x64xf32> to vector<2x32xf32>
    %6 = arith.addf %4, %5 : vector<2x32xf32>
    %c0_5 = arith.constant 0 : index
    %c0_6 = arith.constant 0 : index
    %7 = vector.load %arg8[%c0_5, %c0_6] : memref<2x32xf32, #tpu.memory_space<vmem>>, vector<2x32xf32>
    tpu.vector_store %arg8[%c0_5, %c0_6], %6 {strides = array<i32>} : memref<2x32xf32, #tpu.memory_space<vmem>>, vector<2x32xf32>,
    %c0_i32_7 = arith.constant 0 : i32
    %8 = arith.cmpi eq, %arg1, %c0_i32_7 : i32
    %9 = arith.extui %8 : i1 to i32
    %c0_i32_8 = arith.constant 0 : i32
    %10 = arith.cmpi ne, %9, %c0_i32_8 : i32
    scf.if %10 {
      %c0_9 = arith.constant 0 : index
      %c0_10 = arith.constant 0 : index
      %11 = vector.load %arg8[%c0_9, %c0_10] : memref<2x32xf32, #tpu.memory_space<vmem>>, vector<2x32xf32>
      %c0_11 = arith.constant 0 : index
      %c0_12 = arith.constant 0 : index
      %12 = vector.load %arg3[%c0_11, %c0_12] : memref<32x256xf32, #tpu.memory_space<vmem>>, vector<32x256xf32>
      %cst_13 = arith.constant dense<0.000000e+00> : vector<2x256xf32>
      %13 = tpu.matmul %11, %12, %cst_13 {dimension_numbers = #tpu.dot_dimension_numbers<[1], [0], [0], [1], [0, 0, 1, 1], [], []>} : vector<2x32xf32>, vector<32x256xf32>, vector<2x256xf32> -> vector<2x256xf32>
      %c0_14 = arith.constant 0 : index
      %c0_15 = arith.constant 0 : index
      %14 = vector.load %arg4[%c0_14, %c0_15] : memref<1x256xf32, #tpu.memory_space<vmem>>, vector<1x256xf32>
      %15 = vector.broadcast %14 : vector<1x256xf32> to vector<2x256xf32>
      %16 = arith.addf %13, %15 : vector<2x256xf32>
      %cst_16 = arith.constant 0.000000e+00 : f32
      %17 = vector.broadcast %cst_16 : f32 to vector<2x256xf32>
      %18 = arith.maximumf %16, %17 : vector<2x256xf32>
      %c0_17 = arith.constant 0 : index
      %c0_18 = arith.constant 0 : index
      %19 = vector.load %arg5[%c0_17, %c0_18] : memref<256x128xf32, #tpu.memory_space<vmem>>, vector<256x128xf32>
      %cst_19 = arith.constant dense<0.000000e+00> : vector<2x128xf32>
      %20 = tpu.matmul %18, %19, %cst_19 {dimension_numbers = #tpu.dot_dimension_numbers<[1], [0], [0], [1], [0, 0, 1, 1], [], []>} : vector<2x256xf32>, vector<256x128xf32>, vector<2x128xf32> -> vector<2x128xf32>
      %c0_20 = arith.constant 0 : index
      %c0_21 = arith.constant 0 : index
      %21 = vector.load %arg6[%c0_20, %c0_21] : memref<1x128xf32, #tpu.memory_space<vmem>>, vector<1x128xf32>
      %22 = vector.broadcast %21 : vector<1x128xf32> to vector<2x128xf32>
      %23 = arith.addf %20, %22 : vector<2x128xf32>
      %c0_22 = arith.constant 0 : index
      %c0_23 = arith.constant 0 : index
      %24 = vector.load %arg7[%c0_22, %c0_23] : memref<2x128xf32, #tpu.memory_space<vmem>>, vector<2x128xf32>
      tpu.vector_store %arg7[%c0_22, %c0_23], %23 {strides = array<i32>} : memref<2x128xf32, #tpu.memory_space<vmem>>, vector<2x128xf32>,
    } else {
    }
    return
  }
  func.func @transform_0(%arg0: i32, %arg1: i32) -> (i32, i32, i32) {
    %c0_i32 = arith.constant 0 : i32
    %c0_i32_0 = arith.constant 0 : i32
    return %arg0, %c0_i32, %arg1 : i32, i32, i32
  }
  func.func @transform_1(%arg0: i32, %arg1: i32) -> (i32, i32) {
    %c0_i32 = arith.constant 0 : i32
    %c0_i32_0 = arith.constant 0 : i32
    %c0_i32_1 = arith.constant 0 : i32
    return %c0_i32, %c0_i32_0 : i32, i32
  }
  func.func @transform_2(%arg0: i32, %arg1: i32) -> (i32, i32) {
    %c0_i32 = arith.constant 0 : i32
    %c0_i32_0 = arith.constant 0 : i32
    %c0_i32_1 = arith.constant 0 : i32
    return %c0_i32, %c0_i32_0 : i32, i32
  }
  func.func @transform_3(%arg0: i32, %arg1: i32) -> (i32, i32) {
    %c0_i32 = arith.constant 0 : i32
    %c0_i32_0 = arith.constant 0 : i32
    %c0_i32_1 = arith.constant 0 : i32
    return %c0_i32, %c0_i32_0 : i32, i32
  }
  func.func @transform_4(%arg0: i32, %arg1: i32) -> (i32, i32) {
    %c0_i32 = arith.constant 0 : i32
    %c0_i32_0 = arith.constant 0 : i32
    %c0_i32_1 = arith.constant 0 : i32
    return %c0_i32, %c0_i32_0 : i32, i32
  }
  func.func @transform_5(%arg0: i32, %arg1: i32) -> (i32, i32) {
    %c0_i32 = arith.constant 0 : i32
    %c0_i32_0 = arith.constant 0 : i32
    return %arg0, %c0_i32 : i32, i32
  }
}

</mosaic_0001>

<bundles_post_ra>
// kernel: tpu_custom_call.1
= control target key start
LH: loop header
LB: loop body
LE: loop exit
PB: predicated region body
PF: predicated region fallthrough
CT: control target
= control target key end

     0   :  { %10 = vsyncpa [#allocation4], 0  ;;  %s588_s0 = inlined_call_operand.hbm [shape: f32[2,32,64], index: 0, kind: input, shape index: {}]   ;;  %s589_s1 = inlined_call_operand.hbm [shape: f32[32,256], index: 1, kind: input, shape index: {}]   ;;  %s590_s2 = inlined_call_operand.vmem [shape: f32[1,256], index: 2, kind: input, shape index: {}]   ;;  %s591_s3 = inlined_call_operand.hbm [shape: f32[256,128], index: 3, kind: input, shape index: {}]   ;;  %s592_s4 = inlined_call_operand.vmem [shape: f32[1,128], index: 4, kind: input, shape index: {}]   ;;  %s593_s5 = inlined_call_operand.hbm [shape: f32[2,128], index: 5, kind: output, shape index: {}]  }
   0x1   :  { %11 = vsyncpa [#allocation7], 0 }
   0x2   :  { %12 = vsyncpa [#allocation5], 0  ;;  %s521_s18 = smov [#allocation6]  }
   0x3   :  { %s30_s19 = sshll.u32 %s521_s18, 4  ;;  %s31_s19 = int_to_ptr.vmem [resolvable:$true] %s30_s19 }
   0x4   :  { %s443_s20 = scalar_lea.vmem %s31_s19, 1024  ;;  %p448_p1 = scmp.lt.s32.totalorder %s31_s19, %s31_s19 }
   0x5   :  { %p444_p0 = scmp.ne.s32.totalorder %s31_s19, %s443_s20  ;;  %p449_p2 = scmp.lt.s32.totalorder %s443_s20, %s443_s20 }
   0x7   :  { %p450_p3 = por %p449_p2, %p448_p1 }
   0x9   :  { %p451_p4 = pnand %p450_p3, %p444_p0 }
   0xb   :  { %454 = shalt.err (!%p451_p4)
}
   0xc   :  { %s522_s21 = smov 256   ;;  %s523_s22 = smov 16  }
   0xd   :  { %36 = dma.hbm_to_vmem [thread:$0]  %s589_s1, 1024, %s31_s19, [#allocation7], %s522_s21, %s522_s21, %s523_s22  }
   0xe   :  { %s524_s25 = smov [#allocation3]  }
   0xf   :  { %s18_s26 = sshll.u32 %s524_s25, 4  ;;  %s19_s26 = int_to_ptr.vmem [resolvable:$true] %s18_s26 }
  0x10   :  { %s463_s27 = scalar_lea.vmem %s19_s26, 1024  ;;  %p468_p6 = scmp.lt.s32.totalorder %s19_s26, %s19_s26 }
  0x11   :  { %p464_p5 = scmp.ne.s32.totalorder %s19_s26, %s463_s27  ;;  %p469_p7 = scmp.lt.s32.totalorder %s463_s27, %s463_s27 }
  0x13   :  { %p470_p8 = por %p469_p7, %p468_p6 }
  0x15   :  { %p471_p9 = pnand %p470_p8, %p464_p5 }
  0x17   :  { %474 = shalt.err (!%p471_p9)
}
  0x18   :  { %s525_s28 = smov 128   ;;  %s526_s29 = smov 8  }
  0x19   :  { %24 = dma.hbm_to_vmem [thread:$0]  %s588_s0, 1024, %s19_s26, [#allocation4], %s525_s28, %s525_s28, %s526_s29  }
  0x1a   :  { %s527_s7 = smov [#allocation8]  }
  0x1b   :  { %s44_s8 = sshll.u32 %s527_s7, 4  ;;  %s45_s8 = int_to_ptr.vmem [resolvable:$true] %s44_s8 }
  0x1c   :  { %s483_s1 = scalar_lea.vmem %s45_s8, 4096  ;;  %p488_p11 = scmp.lt.s32.totalorder %s45_s8, %s45_s8 }
  0x1d   :  { %p484_p10 = scmp.ne.s32.totalorder %s45_s8, %s483_s1  ;;  %p489_p12 = scmp.lt.s32.totalorder %s483_s1, %s483_s1 }
  0x1f   :  { %p490_p13 = por %p489_p12, %p488_p11 }
  0x21   :  { %p491_p0 = pnand %p490_p13, %p484_p10 }
  0x23   :  { %494 = shalt.err (!%p491_p0)
}
  0x24   :  { %50 = dma.hbm_to_vmem [thread:$0]  %s591_s3, 4096, %s45_s8, [#allocation7], %s525_s28, %s525_s28, %s526_s29  }
  0x25   :  { %515 = dma.done.wait [#allocation4], 1024  }
  0x26   :  { %516 = vsyncadd [#allocation4], 4294966272 }
  0x27   :  { %517 = dma.done.wait [#allocation7], 5120  }
  0x28   :  { %518 = vsyncadd [#allocation7], 4294962176  ;;  %vm77_vm0 = vcmask 523264   ;;  %v72_v0 = vld [vmem:[#allocation3 + $0x20] sm:$0xff]  ;;  %v73_v2 = vld [vmem:[#allocation3 + $0x28] sm:$0xff]  ;;  %vm66_vm1 = vcmask 254976   ;;  %v110_v49 = vlaneseq }
  0x29   :  { %v68_v1 = vld [vmem:[#allocation3] sm:$0xff]  ;;  %v90_v3 = vsel %vm77_vm0, %v72_v0, 0.0  ;;  %v69_v5 = vld [vmem:[#allocation3 + $0x8] sm:$0xff]  ;;  %v93_v6 = vsel %vm77_vm0, %v73_v2, 0.0  ;;  %v74_v8 = vld [vmem:[#allocation3 + $0x30] sm:$0xff]  ;;  %v528_v16 = vmov 0.0  }
  0x2a   :  { %v78_v4 = vsel %vm77_vm0, %v68_v1, 0.0  ;;  %91 = vadd.xlane.f32.xlu1 %v90_v3  ;;  %v81_v7 = vsel %vm77_vm0, %v69_v5, 0.0  ;;  %v70_v9 = vld [vmem:[#allocation3 + $0x10] sm:$0xff]  ;;  %v96_v10 = vsel %vm77_vm0, %v74_v8, 0.0  ;;  %v75_v12 = vld [vmem:[#allocation3 + $0x38] sm:$0xff]  ;;  %254 = vmatprep.mubr.f32.mxu0 %v528_v16  ;;  %v171_v19 = vld [vmem:[#allocation6 + $0x28] sm:$0xff] }
  0x2b   :  { %79 = vadd.xlane.f32.xlu0 %v78_v4  ;;  %v84_v11 = vsel %vm77_vm0, %v70_v9, 0.0  ;;  %v71_v13 = vld [vmem:[#allocation3 + $0x18] sm:$0xff]  ;;  %v99_v14 = vsel %vm77_vm0, %v75_v12, 0.0  ;;  %67 = vst.msk [vmem:[#allocation2] sm:$0x3] %vm66_vm1, %v528_v16  ;;  %v172_v18 = vld [vmem:[#allocation6 + $0x30] sm:$0xff] }
  0x2c   :  { %v87_v15 = vsel %vm77_vm0, %v71_v13, 0.0  ;;  %v173_v17 = vld [vmem:[#allocation6 + $0x38] sm:$0xff]  ;;  %v170_v20 = vld [vmem:[#allocation6 + $0x20] sm:$0xff]  ;;  %v168_v22 = vld [vmem:[#allocation6 + $0x10] sm:$0xff]  ;;  %v111_v50 = vand.u32 127, %v110_v49  ;;  %v113_v55 = vshrl.u32 %v110_v49, 7 }
  0x2d   :  { %214 = vmatprep.subr.mxu0 %v173_v17  ;;  %v169_v21 = vld [vmem:[#allocation6 + $0x18] sm:$0xff]  ;;  %v167_v23 = vld [vmem:[#allocation6 + $0x8] sm:$0xff]  ;;  %v166_v24 = vld [vmem:[#allocation6] sm:$0xff]  ;;  %vm121_vm2 = vcmask 130112   ;;  %vm128_vm3 = vcmask 195712   ;;  %vm135_vm4 = vcmask 261312  }
  0x2e   :  { %94 = vadd.xlane.f32.xlu1 %v93_v6  ;;  %215 = vmatpush1.msra.mxu0 %v172_v18  ;;  %v294_v25 = vld [vmem:[#allocation8 + $0xf8] sm:$0xff]  ;;  %v293_v27 = vld [vmem:[#allocation8 + $0xf0] sm:$0xff]  ;;  %v292_v29 = vld [vmem:[#allocation8 + $0xe8] sm:$0xff]  ;;  %v116_v53 = vadd.s32 4294967288, %v111_v50  ;;  %v123_v54 = vadd.s32 4294967280, %v111_v50  ;;  %v130_v59 = vadd.s32 4294967272, %v111_v50  ;;  %v114_v61 = vsub.s32 %v111_v50, %v113_v55 }
  0x2f   :  { %82 = vadd.xlane.f32.xlu0 %v81_v7  ;;  %216 = vmatprep.subr.mxu0 %v171_v19  ;;  %v278_v26 = vld [vmem:[#allocation8 + $0x78] sm:$0xff]  ;;  %v277_v28 = vld [vmem:[#allocation8 + $0x70] sm:$0xff]  ;;  %v276_v30 = vld [vmem:[#allocation8 + $0x68] sm:$0xff]  ;;  %vm156_vm5 = vcmask 1041409   ;;  %vm186_vm6 = vcmask 261120   ;;  %s529_s13 = smov [#allocation9]  }
  0x30   :  { %217 = vmatpush1.msra.mxu0 %v170_v20  ;;  %391 = vmatprep.subr.mxu1 %v294_v25  ;;  %v291_v31 = vld [vmem:[#allocation8 + $0xe0] sm:$0xff]  ;;  %v290_v33 = vld [vmem:[#allocation8 + $0xd8] sm:$0xff]  ;;  %v289_v35 = vld [vmem:[#allocation8 + $0xd0] sm:$0xff]  ;;  %v119_v58 = vsub.s32 %v116_v53, %v113_v55  ;;  %v126_v60 = vsub.s32 %v123_v54, %v113_v55  ;;  %v133_v2 = vsub.s32 %v130_v59, %v113_v55  ;;  %s379_s14 = sshll.u32 %s529_s13, 4  ;;  %s380_s14 = int_to_ptr.vmem [resolvable:$true] %s379_s14 }
  0x31   :  { %218 = vmatprep.subr.mxu0 %v169_v21  ;;  %392 = vmatpush3.msra.mxu1 %v278_v26  ;;  %v275_v32 = vld [vmem:[#allocation8 + $0x60] sm:$0xff]  ;;  %v274_v34 = vld [vmem:[#allocation8 + $0x58] sm:$0xff]  ;;  %v273_v36 = vld [vmem:[#allocation8 + $0x50] sm:$0xff]  ;;  %p500_p2 = scmp.lt.s32.totalorder %s380_s14, %s380_s14 }
  0x32   :  { %97 = vadd.xlane.f32.xlu1 %v96_v10  ;;  %219 = vmatpush1.msra.mxu0 %v168_v22  ;;  %v288_v37 = vld [vmem:[#allocation8 + $0xc8] sm:$0xff]  ;;  %v287_v39 = vld [vmem:[#allocation8 + $0xc0] sm:$0xff]  ;;  %v286_v41 = vld [vmem:[#allocation8 + $0xb8] sm:$0xff] }
  0x33   :  { %85 = vadd.xlane.f32.xlu0 %v84_v11  ;;  %220 = vmatprep.subr.mxu0 %v167_v23  ;;  %v272_v38 = vld [vmem:[#allocation8 + $0x48] sm:$0xff]  ;;  %v271_v40 = vld [vmem:[#allocation8 + $0x40] sm:$0xff]  ;;  %v270_v42 = vld [vmem:[#allocation8 + $0x38] sm:$0xff] }
  0x34   :  { %221 = vmatpush1.msra.mxu0 %v166_v24  ;;  %393 = vmatprep.subr.mxu1 %v293_v27  ;;  %v285_v43 = vld [vmem:[#allocation8 + $0xb0] sm:$0xff]  ;;  %v284_v45 = vld [vmem:[#allocation8 + $0xa8] sm:$0xff]  ;;  %v283_v47 = vld [vmem:[#allocation8 + $0xa0] sm:$0xff] }
  0x35   :  { %394 = vmatpush3.msra.mxu1 %v277_v28  ;;  %v269_v44 = vld [vmem:[#allocation8 + $0x30] sm:$0xff]  ;;  %v268_v46 = vld [vmem:[#allocation8 + $0x28] sm:$0xff]  ;;  %v267_v48 = vld [vmem:[#allocation8 + $0x20] sm:$0xff] }
  0x36   :  { %100 = vadd.xlane.f32.xlu1 %v99_v14  ;;  %395 = vmatprep.subr.mxu1 %v292_v29  ;;  %v282_v21 = vld [vmem:[#allocation8 + $0x98] sm:$0xff]  ;;  %v281_v23 = vld [vmem:[#allocation8 + $0x90] sm:$0xff]  ;;  %v280_v25 = vld [vmem:[#allocation8 + $0x88] sm:$0xff]  ;;  %v178_v29 = vsub.s32 0, %v113_v55 }
  0x37   :  { %88 = vadd.xlane.f32.xlu0 %v87_v15  ;;  %396 = vmatpush3.msra.mxu1 %v276_v30  ;;  %v76_v15 = vld [vmem:[#allocation2] sm:$0x3]  ;;  %v265_v24 = vld [vmem:[#allocation8 + $0x10] sm:$0xff]  ;;  %v264_v26 = vld [vmem:[#allocation8 + $0x8] sm:$0xff] }
  0x38   :  { %397 = vmatprep.subr.mxu1 %v291_v31  ;;  %v266_v22 = vld [vmem:[#allocation8 + $0x18] sm:$0xff]  ;;  %v279_v27 = vld [vmem:[#allocation8 + $0x80] sm:$0xff]  ;;  %v182_v31 = vsub.s32 1, %v113_v55 }
  0x39   :  { %398 = vmatpush3.msra.mxu1 %v275_v32  ;;  %v263_v28 = vld [vmem:[#allocation8] sm:$0xff]  ;;  %v174_v30 = vld [vmem:[%s590_s2] sm:$0x3]  ;;  %s495_s2 = scalar_lea.vmem %s380_s14, 32 }
  0x3a   :  { %399 = vmatprep.subr.mxu1 %v290_v33  ;;  %v179_v32 = vrot.slane %v174_v30, %v178_v29  ;;  %v183_v33 = vrot.slane %v174_v30, %v182_v31  ;;  %p496_p1 = scmp.ne.s32.totalorder %s380_s14, %s495_s2  ;;  %p501_p3 = scmp.lt.s32.totalorder %s495_s2, %s495_s2 }
  0x3b   :  { %400 = vmatpush3.msra.mxu1 %v274_v34 }
  0x3c   :  { %401 = vmatprep.subr.mxu1 %v289_v35  ;;  %p502_p4 = por %p501_p3, %p500_p2 }
  0x3d   :  { %402 = vmatpush3.msra.mxu1 %v273_v36 }
  0x3e   :  { %403 = vmatprep.subr.mxu1 %v288_v37  ;;  %p503_p5 = pnand %p502_p4, %p496_p1 }
  0x3f   :  { %404 = vmatpush3.msra.mxu1 %v272_v38 }
  0x40   :  { %405 = vmatprep.subr.mxu1 %v287_v39 }
  0x41   :  { %406 = vmatpush3.msra.mxu1 %v271_v40 }
  0x42   :  { %407 = vmatprep.subr.mxu1 %v286_v41  ;;  %v390_v41 = vld [vmem:[%s592_s4] ss:$0 sm:$0xff] }
  0x43   :  { %408 = vmatpush3.msra.mxu1 %v270_v42 }
  0x44   :  { %409 = vmatprep.subr.mxu1 %v285_v43 }
  0x45   :  { %410 = vmatpush3.msra.mxu1 %v269_v44 }
  0x46   :  { %411 = vmatprep.subr.mxu1 %v284_v45 }
  0x47   :  { %412 = vmatpush3.msra.mxu1 %v268_v46 }
  0x48   :  { %413 = vmatprep.subr.mxu1 %v283_v47 }
  0x49   :  { %414 = vmatpush3.msra.mxu1 %v267_v48 }
  0x4a   :  { %415 = vmatprep.subr.mxu1 %v282_v21 }
  0x4b   :  { %416 = vmatpush3.msra.mxu1 %v266_v22 }
  0x4c   :  { %417 = vmatprep.subr.mxu1 %v281_v23 }
  0x4d   :  { %418 = vmatpush3.msra.mxu1 %v265_v24 }
  0x4e   :  { %419 = vmatprep.subr.mxu1 %v280_v25 }
  0x4f   :  { %420 = vmatpush3.msra.mxu1 %v264_v26 }
  0x50   :  { %421 = vmatprep.subr.mxu1 %v279_v27 }
  0x51   :  { %422 = vmatpush3.msra.mxu1 %v263_v28 }
  0xb3   :  { %v92_v51 = vpop.xlane.xlu1 %91 }
  0xb4   :  { %v80_v52 = vpop.xlane.xlu0 %79  ;;  %v140_v5 = vrot.slane %v92_v51, %v114_v61 }
  0xb5   :  { %v115_v6 = vrot.slane %v80_v52, %v114_v61 }
  0xb7   :  { %v95_v56 = vpop.xlane.xlu1 %94 }
  0xb8   :  { %v83_v57 = vpop.xlane.xlu0 %82  ;;  %v144_v0 = vrot.slane %v95_v56, %v119_v58 }
  0xb9   :  { %v120_v1 = vrot.slane %v83_v57, %v119_v58 }
  0xba   :  { %v145_v9 = vsel %vm121_vm2, %v144_v0, %v140_v5 }
  0xbb   :  { %v98_v62 = vpop.xlane.xlu1 %97  ;;  %v122_v10 = vsel %vm121_vm2, %v120_v1, %v115_v6 }
  0xbc   :  { %v86_v63 = vpop.xlane.xlu0 %85  ;;  %v149_v3 = vrot.slane %v98_v62, %v126_v60 }
  0xbd   :  { %v127_v4 = vrot.slane %v86_v63, %v126_v60 }
  0xbe   :  { %v150_v13 = vsel %vm128_vm3, %v149_v3, %v145_v9 }
  0xbf   :  { %v101_v7 = vpop.xlane.xlu1 %100  ;;  %v129_v14 = vsel %vm128_vm3, %v127_v4, %v122_v10 }
  0xc0   :  { %v89_v8 = vpop.xlane.xlu0 %88  ;;  %v154_v11 = vrot.slane %v101_v7, %v133_v2 }
  0xc1   :  { %v134_v12 = vrot.slane %v89_v8, %v133_v2 }
  0xc2   :  { %v155_v16 = vsel %vm135_vm4, %v154_v11, %v150_v13 }
  0xc3   :  { %v136_v17 = vsel %vm135_vm4, %v134_v12, %v129_v14 }
  0xc4   :  { %v157_v18 = vsel %vm156_vm5, %v155_v16, %v136_v17 }
  0xc5   :  { %v159_v19 = vadd.f32 %v157_v18, %v76_v15 }
  0xc7   :  { %161 = vst.msk [vmem:[#allocation2] sm:$0x3] %vm66_vm1, %v159_v19 }
  0xce   :  { %v165_v20 = vld [vmem:[#allocation2] sm:$0x3] }
  0xcf   :  { %389 = vmatmul.mubr.msk.f32.vlgmr.msra.gmra.mxu0 %vm186_vm6, %v165_v20 }
 0x18f   :  { %v256_v34 = vpop.f32.mrf.mxu0 }
 0x190   :  { %v257_v35 = vadd.f32 %v256_v34, %v179_v32 }
 0x191   :  { %v258_v36 = vpop.f32.mrf.mxu0 }
 0x192   :  { %v259_v37 = vadd.f32 %v258_v36, %v183_v33  ;;  %v261_v39 = vmax.f32 %v257_v35, 0.0 }
 0x194   :  { %v262_v38 = vmax.f32 %v259_v37, 0.0 }
 0x196   :  { %366 = vmatprep.mubr.f32.mxu1 %v262_v38 }
 0x197   :  { %367 = vmatmul.mubr.f32.vlgmr.msra.gmra.mxu1 %v261_v39 }
 0x257   :  { %v423_v40 = vpop.f32.mrf.mxu1 }
 0x259   :  { %v424_v42 = vpop.f32.mrf.mxu1 }
 0x25a   :  { %v425_v43 = vadd.f32 %v424_v42, %v423_v40 }
 0x25c   :  { %v369_v44 = vadd.f32 %v425_v43, %v390_v41 }
 0x25e   :  { %372 = vst [vmem:[#allocation9] sm:$0x3] %v369_v44 }
 0x25f   :  { %506 = shalt.err (!%p503_p5)
}
 0x260   :  { %382 = dma.vmem_to_hbm [thread:$0]  %s380_s14, 32, %s593_s5, [#allocation5]  }
 0x261   :  { %519 = dma.done.wait [#allocation5], 32  }
 0x262   :  { %520 = vsyncadd [#allocation5], 4294967264 }
 0x263   :  { %386 = vsyncpa [#allocation4], 1 }
 0x264   :  { %387 = vsyncpa [#allocation7], 1 }
 0x265   :  { %388 = vsyncpa [#allocation5], 1 }

</bundles_post_ra>
